<compile_context>
chip_gen: v7x
topology: tpu7x:2x2x1
jax: 0.10.0
libtpu: 0.0.40
codegen_flags: <defaults>
</compile_context>

<pallas_src>
import functools

import jax
import jax.numpy as jnp
from jax.experimental import pallas as pl
from jax.experimental.pallas import tpu as pltpu

NEG_BIG = -1e30      # finite "-inf": padded slots never create NaN/Inf
LANES = 128          # TPU lane width
SUBLANES = 8         # TPU sublane count (f32)


def _logaddexp(a, b):
    """Numerically safe logaddexp for finite inputs (incl. NEG_BIG padding)."""
    m = jnp.maximum(a, b)
    return m + jnp.log(jnp.exp(a - m) + jnp.exp(b - m))


def _coxph_kernel(xe_ref, out_ref, carry_ref, acc_ref, evsum_ref, *, rows):
    """One grid step processes a (rows, 128) chunk of the sorted sequence.

    xe_ref : (2, rows, 128) packed [log-risk ; event] tile (one lane-dense DMA)
    out_ref: (1, 1) scalar loss, written on the last grid step
    carry_ref : (1, 1) running logsumexp of every element seen so far
    acc_ref   : (1, 1) running sum of e * (x - logcumsumexp)
    evsum_ref : (1, 1) running sum of e
    """
    t = pl.program_id(0)

    @pl.when(t == 0)
    def _init():
        carry_ref[...] = jnp.full((1, 1), NEG_BIG, dtype=jnp.float32)
        acc_ref[...] = jnp.zeros((1, 1), dtype=jnp.float32)
        evsum_ref[...] = jnp.zeros((1, 1), dtype=jnp.float32)

    x = xe_ref[0]    # (rows, 128) sorted log-risks (row-major scan order)
    e = xe_ref[1]    # (rows, 128) event indicators (0/1)

    # --- level 1: intra-row inclusive logcumsumexp along lanes --------------
    # Hillis-Steele scan: log2(128) = 7 steps of XLU roll + masked logaddexp.
    lane_id = jax.lax.broadcasted_iota(jnp.int32, (rows, LANES), 1)
    scanned = x
    shift = 1
    for _ in range(7):
        rolled = pltpu.roll(scanned, shift, axis=1)      # rolled[r,c] = scanned[r,c-shift]
        scanned = jnp.where(lane_id >= shift, _logaddexp(scanned, rolled), scanned)
        shift *= 2

    # --- level 2: exclusive per-row offsets (carry across rows and tiles) ---
    # offsets[r] = logsumexp(carry_in, row-totals 0..r-1).  rows is small
    # (8 per 1024-element block), so an unrolled loop over (1,1) static slices
    # is cheap and avoids sublane rotates / full reductions.
    row_id = jax.lax.broadcasted_iota(jnp.int32, (rows, 1), 0)
    carry = carry_ref[...]                                        # (1, 1)
    offsets = jnp.zeros((rows, 1), dtype=jnp.float32)
    for r in range(rows):
        offsets = jnp.where(row_id == r, carry, offsets)
        total_r = scanned[r:r + 1, LANES - 1:LANES]               # (1, 1) static slice
        carry = _logaddexp(carry, total_r)
    # carry is now the logsumexp of everything through this tile (last element
    # of the global prefix) -- cheap static-slice chain, no XLU max-reduce.
    carry_ref[...] = carry

    lcse = _logaddexp(scanned, offsets)                           # (rows, 128)

    # Padded slots have e == 0 and finite x/lcse, so they contribute exactly 0.
    acc_ref[...] += jnp.sum(e * (x - lcse), keepdims=True)
    evsum_ref[...] += jnp.sum(e, keepdims=True)

    @pl.when(t == pl.num_programs(0) - 1)
    def _finalize():
        # Guard sum(events) == 0 (the PyTorch reference is NaN/Inf there).
        denom = jnp.maximum(evsum_ref[...], 1.0)
        out_ref[...] = -acc_ref[...] / denom


def coxph_loss(risk_preds, durations, events, *, block=1024):
    """Pallas implementation of CoxPHLoss.forward.

    risk_preds: (N,) log-risk predictions
    durations:  (N,) survival / censoring times
    events:     (N,) event indicator (1 = event, 0 = censored)
    returns scalar f32 loss
    """
    assert block % (SUBLANES * LANES) == 0, "block must be a multiple of 1024"
    n = risk_preds.shape[0]
    rows = block // LANES

    # TODO(synk): torch.argsort (data-dependent sort) has no clean Pallas
    # equivalent; the risk-set ordering stays in plain JAX.
    order = jnp.argsort(-durations)                               # descending durations
    packed = jnp.stack([risk_preds.astype(jnp.float32),
                        events.astype(jnp.float32)], axis=0)      # (2, N)
    packed = jnp.take(packed, order, axis=1)                      # one fused gather
    rp, ev = packed[0], packed[1]

    n_pad = pl.cdiv(n, block) * block
    pad = n_pad - n
    rp = jnp.pad(rp, (0, pad), constant_values=NEG_BIG)   # pads add ~0 in log-space
    ev = jnp.pad(ev, (0, pad), constant_values=0.0)       # pads never count as events

    total_rows = n_pad // LANES
    # Single packed operand: one lane- and sublane-dense (2, rows, 128) DMA
    # per grid step instead of three tiny / 1-lane-wide DMAs.
    xe = jnp.stack([rp.reshape(total_rows, LANES),
                    ev.reshape(total_rows, LANES)], axis=0)       # (2, total_rows, 128)

    num_blocks = total_rows // rows

    out = pl.pallas_call(
        functools.partial(_coxph_kernel, rows=rows),
        out_shape=jax.ShapeDtypeStruct((1, 1), jnp.float32),
        grid_spec=pltpu.PrefetchScalarGridSpec(
            num_scalar_prefetch=0,
            grid=(num_blocks,),
            in_specs=[pl.BlockSpec((2, rows, LANES), lambda i: (0, i, 0))],
            out_specs=pl.BlockSpec((1, 1), lambda i: (0, 0)),
            scratch_shapes=[pltpu.VMEM((1, 1), jnp.float32)] * 3,
        ),
        compiler_params=pltpu.CompilerParams(
            # The cumulative scan carries state across tiles -> sequential axis.
            dimension_semantics=("arbitrary",),
        ),
        cost_estimate=pl.CostEstimate(
            flops=64 * n_pad,
            transcendentals=24 * n_pad,
            bytes_accessed=8 * n_pad + 4,
        ),
    )(xe)

    return out[0, 0]


if __name__ == "__main__":
    key = jax.random.PRNGKey(0)
    k1, k2, k3 = jax.random.split(key, 3)

    # 2500 patients -> 3 grid steps of 1024 elements (8 x 128 each), exercising
    # both the cross-tile / cross-row carry and the padded tail.
    N = 2500
    risk_preds = jax.random.normal(k1, (N,), dtype=jnp.float32)
    durations = jax.random.uniform(k2, (N,), dtype=jnp.float32)
    events = (jax.random.uniform(k3, (N,)) < 0.7).astype(jnp.float32)
    events = events.at[0].set(1.0)   # guarantee at least one observed event

    loss = coxph_loss(risk_preds, durations, events, block=1024)
    jax.block_until_ready(loss)

    # Plain-JAX reference (same math as the PyTorch module).
    order = jnp.argsort(-durations)
    rp = risk_preds[order]
    ev = events[order]
    mmax = jnp.max(rp)
    lcse_ref = mmax + jnp.log(jnp.cumsum(jnp.exp(rp - mmax)))
    ref = -jnp.sum(rp * ev - lcse_ref * ev) / jnp.sum(ev)

    assert loss.shape == ()
    assert bool(jnp.isfinite(loss))
    assert jnp.allclose(loss, ref, rtol=1e-4, atol=1e-3), (loss, ref)

    print("KERNEL_OK")
</pallas_src>

<mosaic_0001>
module attributes {stable_mosaic.version = 11 : i64} {
  func.func @_coxph_kernel(%arg0: i32, %arg1: memref<2x8x128xf32, #tpu.memory_space<vmem>>, %arg2: memref<1x1xf32, #tpu.memory_space<vmem>>, %arg3: memref<1x1xf32, #tpu.memory_space<vmem>>, %arg4: memref<1x1xf32, #tpu.memory_space<vmem>>, %arg5: memref<1x1xf32, #tpu.memory_space<vmem>>) attributes {dimension_semantics = [#tpu.dimension_semantics<arbitrary>], iteration_bounds = array<i64: 3>, scalar_prefetch = 0 : i64, scratch_operands = 3 : i64, tpu.core_type = #tpu.core_type<tc>, window_params = [{transform_indices = @transform_0, window_bounds = array<i64: 2, 8, 128>}, {pipeline_mode = #tpu.pipeline_mode<synchronous>, transform_indices = @transform_1, window_bounds = array<i64: 1, 1>}]} {
    %c0_i32 = arith.constant 0 : i32
    %0 = arith.cmpi eq, %arg0, %c0_i32 : i32
    %1 = arith.extui %0 : i1 to i32
    %c0_i32_0 = arith.constant 0 : i32
    %2 = arith.cmpi ne, %1, %c0_i32_0 : i32
    scf.if %2 {
      %cst_32 = arith.constant -1.000000e+30 : f32
      %239 = vector.broadcast %cst_32 : f32 to vector<1x1xf32>
      %c0_33 = arith.constant 0 : index
      %c0_34 = arith.constant 0 : index
      %240 = vector.load %arg3[%c0_33, %c0_34] : memref<1x1xf32, #tpu.memory_space<vmem>>, vector<1x1xf32>
      tpu.vector_store %arg3[%c0_33, %c0_34], %239 {strides = array<i32>} : memref<1x1xf32, #tpu.memory_space<vmem>>, vector<1x1xf32>,
      %cst_35 = arith.constant 0.000000e+00 : f32
      %241 = vector.broadcast %cst_35 : f32 to vector<1x1xf32>
      %c0_36 = arith.constant 0 : index
      %c0_37 = arith.constant 0 : index
      %242 = vector.load %arg4[%c0_36, %c0_37] : memref<1x1xf32, #tpu.memory_space<vmem>>, vector<1x1xf32>
      tpu.vector_store %arg4[%c0_36, %c0_37], %241 {strides = array<i32>} : memref<1x1xf32, #tpu.memory_space<vmem>>, vector<1x1xf32>,
      %cst_38 = arith.constant 0.000000e+00 : f32
      %243 = vector.broadcast %cst_38 : f32 to vector<1x1xf32>
      %c0_39 = arith.constant 0 : index
      %c0_40 = arith.constant 0 : index
      %244 = vector.load %arg5[%c0_39, %c0_40] : memref<1x1xf32, #tpu.memory_space<vmem>>, vector<1x1xf32>
      tpu.vector_store %arg5[%c0_39, %c0_40], %243 {strides = array<i32>} : memref<1x1xf32, #tpu.memory_space<vmem>>, vector<1x1xf32>,
    } else {
    }
    %c0 = arith.constant 0 : index
    %c0_1 = arith.constant 0 : index
    %c0_2 = arith.constant 0 : index
    %3 = vector.load %arg1[%c0, %c0_1, %c0_2] : memref<2x8x128xf32, #tpu.memory_space<vmem>>, vector<1x8x128xf32>
    %4 = vector.shape_cast %3 : vector<1x8x128xf32> to vector<8x128xf32>
    %c1 = arith.constant 1 : index
    %c0_3 = arith.constant 0 : index
    %c0_4 = arith.constant 0 : index
    %5 = vector.load %arg1[%c1, %c0_3, %c0_4] : memref<2x8x128xf32, #tpu.memory_space<vmem>>, vector<1x8x128xf32>
    %6 = vector.shape_cast %5 : vector<1x8x128xf32> to vector<8x128xf32>
    %7 = tpu.iota {dimensions = array<i32: 1>} : vector<8x128xi32>
    %c1_i32 = arith.constant 1 : i32
    %8 = tpu.dynamic_rotate %4 by %c1_i32 dim 1 : vector<8x128xf32>, i32 -> vector<8x128xf32>
    %c1_i32_5 = arith.constant 1 : i32
    %9 = vector.broadcast %c1_i32_5 : i32 to vector<8x128xi32>
    %10 = arith.cmpi sge, %7, %9 : vector<8x128xi32>
    %11 = arith.maximumf %4, %8 : vector<8x128xf32>
    %12 = arith.subf %4, %11 : vector<8x128xf32>
    %13 = math.exp %12 : vector<8x128xf32>
    %14 = arith.subf %8, %11 : vector<8x128xf32>
    %15 = math.exp %14 : vector<8x128xf32>
    %16 = arith.addf %13, %15 : vector<8x128xf32>
    %17 = math.log %16 : vector<8x128xf32>
    %18 = arith.addf %11, %17 : vector<8x128xf32>
    %19 = arith.select %10, %18, %4 : vector<8x128xi1>, vector<8x128xf32>
    %c2_i32 = arith.constant 2 : i32
    %20 = tpu.dynamic_rotate %19 by %c2_i32 dim 1 : vector<8x128xf32>, i32 -> vector<8x128xf32>
    %c2_i32_6 = arith.constant 2 : i32
    %21 = vector.broadcast %c2_i32_6 : i32 to vector<8x128xi32>
    %22 = arith.cmpi sge, %7, %21 : vector<8x128xi32>
    %23 = arith.maximumf %19, %20 : vector<8x128xf32>
    %24 = arith.subf %19, %23 : vector<8x128xf32>
    %25 = math.exp %24 : vector<8x128xf32>
    %26 = arith.subf %20, %23 : vector<8x128xf32>
    %27 = math.exp %26 : vector<8x128xf32>
    %28 = arith.addf %25, %27 : vector<8x128xf32>
    %29 = math.log %28 : vector<8x128xf32>
    %30 = arith.addf %23, %29 : vector<8x128xf32>
    %31 = arith.select %22, %30, %19 : vector<8x128xi1>, vector<8x128xf32>
    %c4_i32 = arith.constant 4 : i32
    %32 = tpu.dynamic_rotate %31 by %c4_i32 dim 1 : vector<8x128xf32>, i32 -> vector<8x128xf32>
    %c4_i32_7 = arith.constant 4 : i32
    %33 = vector.broadcast %c4_i32_7 : i32 to vector<8x128xi32>
    %34 = arith.cmpi sge, %7, %33 : vector<8x128xi32>
    %35 = arith.maximumf %31, %32 : vector<8x128xf32>
    %36 = arith.subf %31, %35 : vector<8x128xf32>
    %37 = math.exp %36 : vector<8x128xf32>
    %38 = arith.subf %32, %35 : vector<8x128xf32>
    %39 = math.exp %38 : vector<8x128xf32>
    %40 = arith.addf %37, %39 : vector<8x128xf32>
    %41 = math.log %40 : vector<8x128xf32>
    %42 = arith.addf %35, %41 : vector<8x128xf32>
    %43 = arith.select %34, %42, %31 : vector<8x128xi1>, vector<8x128xf32>
    %c8_i32 = arith.constant 8 : i32
    %44 = tpu.dynamic_rotate %43 by %c8_i32 dim 1 : vector<8x128xf32>, i32 -> vector<8x128xf32>
    %c8_i32_8 = arith.constant 8 : i32
    %45 = vector.broadcast %c8_i32_8 : i32 to vector<8x128xi32>
    %46 = arith.cmpi sge, %7, %45 : vector<8x128xi32>
    %47 = arith.maximumf %43, %44 : vector<8x128xf32>
    %48 = arith.subf %43, %47 : vector<8x128xf32>
    %49 = math.exp %48 : vector<8x128xf32>
    %50 = arith.subf %44, %47 : vector<8x128xf32>
    %51 = math.exp %50 : vector<8x128xf32>
    %52 = arith.addf %49, %51 : vector<8x128xf32>
    %53 = math.log %52 : vector<8x128xf32>
    %54 = arith.addf %47, %53 : vector<8x128xf32>
    %55 = arith.select %46, %54, %43 : vector<8x128xi1>, vector<8x128xf32>
    %c16_i32 = arith.constant 16 : i32
    %56 = tpu.dynamic_rotate %55 by %c16_i32 dim 1 : vector<8x128xf32>, i32 -> vector<8x128xf32>
    %c16_i32_9 = arith.constant 16 : i32
    %57 = vector.broadcast %c16_i32_9 : i32 to vector<8x128xi32>
    %58 = arith.cmpi sge, %7, %57 : vector<8x128xi32>
    %59 = arith.maximumf %55, %56 : vector<8x128xf32>
    %60 = arith.subf %55, %59 : vector<8x128xf32>
    %61 = math.exp %60 : vector<8x128xf32>
    %62 = arith.subf %56, %59 : vector<8x128xf32>
    %63 = math.exp %62 : vector<8x128xf32>
    %64 = arith.addf %61, %63 : vector<8x128xf32>
    %65 = math.log %64 : vector<8x128xf32>
    %66 = arith.addf %59, %65 : vector<8x128xf32>
    %67 = arith.select %58, %66, %55 : vector<8x128xi1>, vector<8x128xf32>
    %c32_i32 = arith.constant 32 : i32
    %68 = tpu.dynamic_rotate %67 by %c32_i32 dim 1 : vector<8x128xf32>, i32 -> vector<8x128xf32>
    %c32_i32_10 = arith.constant 32 : i32
    %69 = vector.broadcast %c32_i32_10 : i32 to vector<8x128xi32>
    %70 = arith.cmpi sge, %7, %69 : vector<8x128xi32>
    %71 = arith.maximumf %67, %68 : vector<8x128xf32>
    %72 = arith.subf %67, %71 : vector<8x128xf32>
    %73 = math.exp %72 : vector<8x128xf32>
    %74 = arith.subf %68, %71 : vector<8x128xf32>
    %75 = math.exp %74 : vector<8x128xf32>
    %76 = arith.addf %73, %75 : vector<8x128xf32>
    %77 = math.log %76 : vector<8x128xf32>
    %78 = arith.addf %71, %77 : vector<8x128xf32>
    %79 = arith.select %70, %78, %67 : vector<8x128xi1>, vector<8x128xf32>
    %c64_i32 = arith.constant 64 : i32
    %80 = tpu.dynamic_rotate %79 by %c64_i32 dim 1 : vector<8x128xf32>, i32 -> vector<8x128xf32>
    %c64_i32_11 = arith.constant 64 : i32
    %81 = vector.broadcast %c64_i32_11 : i32 to vector<8x128xi32>
    %82 = arith.cmpi sge, %7, %81 : vector<8x128xi32>
    %83 = arith.maximumf %79, %80 : vector<8x128xf32>
    %84 = arith.subf %79, %83 : vector<8x128xf32>
    %85 = math.exp %84 : vector<8x128xf32>
    %86 = arith.subf %80, %83 : vector<8x128xf32>
    %87 = math.exp %86 : vector<8x128xf32>
    %88 = arith.addf %85, %87 : vector<8x128xf32>
    %89 = math.log %88 : vector<8x128xf32>
    %90 = arith.addf %83, %89 : vector<8x128xf32>
    %91 = arith.select %82, %90, %79 : vector<8x128xi1>, vector<8x128xf32>
    %92 = tpu.iota {dimensions = array<i32: 0>} : vector<8x1xi32>
    %c0_12 = arith.constant 0 : index
    %c0_13 = arith.constant 0 : index
    %93 = vector.load %arg3[%c0_12, %c0_13] : memref<1x1xf32, #tpu.memory_space<vmem>>, vector<1x1xf32>
    %cst = arith.constant 0.000000e+00 : f32
    %94 = vector.broadcast %cst : f32 to vector<8x1xf32>
    %c0_i32_14 = arith.constant 0 : i32
    %95 = vector.broadcast %c0_i32_14 : i32 to vector<8x1xi32>
    %96 = arith.cmpi eq, %92, %95 : vector<8x1xi32>
    %97 = vector.shape_cast %93 : vector<1x1xf32> to vector<1x1xf32>
    %98 = vector.broadcast %97 : vector<1x1xf32> to vector<8x1xf32>
    %99 = arith.select %96, %98, %94 : vector<8x1xi1>, vector<8x1xf32>
    %100 = vector.extract_strided_slice %91 {offsets = [0, 127], sizes = [1, 1], strides = [1, 1]} : vector<8x128xf32> to vector<1x1xf32>
    %101 = arith.maximumf %93, %100 : vector<1x1xf32>
    %102 = arith.subf %93, %101 : vector<1x1xf32>
    %103 = math.exp %102 : vector<1x1xf32>
    %104 = arith.subf %100, %101 : vector<1x1xf32>
    %105 = math.exp %104 : vector<1x1xf32>
    %106 = arith.addf %103, %105 : vector<1x1xf32>
    %107 = math.log %106 : vector<1x1xf32>
    %108 = arith.addf %101, %107 : vector<1x1xf32>
    %c1_i32_15 = arith.constant 1 : i32
    %109 = vector.broadcast %c1_i32_15 : i32 to vector<8x1xi32>
    %110 = arith.cmpi eq, %92, %109 : vector<8x1xi32>
    %111 = vector.shape_cast %108 : vector<1x1xf32> to vector<1x1xf32>
    %112 = vector.broadcast %111 : vector<1x1xf32> to vector<8x1xf32>
    %113 = arith.select %110, %112, %99 : vector<8x1xi1>, vector<8x1xf32>
    %114 = vector.extract_strided_slice %91 {offsets = [1, 127], sizes = [1, 1], strides = [1, 1]} : vector<8x128xf32> to vector<1x1xf32>
    %115 = arith.maximumf %108, %114 : vector<1x1xf32>
    %116 = arith.subf %108, %115 : vector<1x1xf32>
    %117 = math.exp %116 : vector<1x1xf32>
    %118 = arith.subf %114, %115 : vector<1x1xf32>
    %119 = math.exp %118 : vector<1x1xf32>
    %120 = arith.addf %117, %119 : vector<1x1xf32>
    %121 = math.log %120 : vector<1x1xf32>
    %122 = arith.addf %115, %121 : vector<1x1xf32>
    %c2_i32_16 = arith.constant 2 : i32
    %123 = vector.broadcast %c2_i32_16 : i32 to vector<8x1xi32>
    %124 = arith.cmpi eq, %92, %123 : vector<8x1xi32>
    %125 = vector.shape_cast %122 : vector<1x1xf32> to vector<1x1xf32>
    %126 = vector.broadcast %125 : vector<1x1xf32> to vector<8x1xf32>
    %127 = arith.select %124, %126, %113 : vector<8x1xi1>, vector<8x1xf32>
    %128 = vector.extract_strided_slice %91 {offsets = [2, 127], sizes = [1, 1], strides = [1, 1]} : vector<8x128xf32> to vector<1x1xf32>
    %129 = arith.maximumf %122, %128 : vector<1x1xf32>
    %130 = arith.subf %122, %129 : vector<1x1xf32>
    %131 = math.exp %130 : vector<1x1xf32>
    %132 = arith.subf %128, %129 : vector<1x1xf32>
    %133 = math.exp %132 : vector<1x1xf32>
    %134 = arith.addf %131, %133 : vector<1x1xf32>
    %135 = math.log %134 : vector<1x1xf32>
    %136 = arith.addf %129, %135 : vector<1x1xf32>
    %c3_i32 = arith.constant 3 : i32
    %137 = vector.broadcast %c3_i32 : i32 to vector<8x1xi32>
    %138 = arith.cmpi eq, %92, %137 : vector<8x1xi32>
    %139 = vector.shape_cast %136 : vector<1x1xf32> to vector<1x1xf32>
    %140 = vector.broadcast %139 : vector<1x1xf32> to vector<8x1xf32>
    %141 = arith.select %138, %140, %127 : vector<8x1xi1>, vector<8x1xf32>
    %142 = vector.extract_strided_slice %91 {offsets = [3, 127], sizes = [1, 1], strides = [1, 1]} : vector<8x128xf32> to vector<1x1xf32>
    %143 = arith.maximumf %136, %142 : vector<1x1xf32>
    %144 = arith.subf %136, %143 : vector<1x1xf32>
    %145 = math.exp %144 : vector<1x1xf32>
    %146 = arith.subf %142, %143 : vector<1x1xf32>
    %147 = math.exp %146 : vector<1x1xf32>
    %148 = arith.addf %145, %147 : vector<1x1xf32>
    %149 = math.log %148 : vector<1x1xf32>
    %150 = arith.addf %143, %149 : vector<1x1xf32>
    %c4_i32_17 = arith.constant 4 : i32
    %151 = vector.broadcast %c4_i32_17 : i32 to vector<8x1xi32>
    %152 = arith.cmpi eq, %92, %151 : vector<8x1xi32>
    %153 = vector.shape_cast %150 : vector<1x1xf32> to vector<1x1xf32>
    %154 = vector.broadcast %153 : vector<1x1xf32> to vector<8x1xf32>
    %155 = arith.select %152, %154, %141 : vector<8x1xi1>, vector<8x1xf32>
    %156 = vector.extract_strided_slice %91 {offsets = [4, 127], sizes = [1, 1], strides = [1, 1]} : vector<8x128xf32> to vector<1x1xf32>
    %157 = arith.maximumf %150, %156 : vector<1x1xf32>
    %158 = arith.subf %150, %157 : vector<1x1xf32>
    %159 = math.exp %158 : vector<1x1xf32>
    %160 = arith.subf %156, %157 : vector<1x1xf32>
    %161 = math.exp %160 : vector<1x1xf32>
    %162 = arith.addf %159, %161 : vector<1x1xf32>
    %163 = math.log %162 : vector<1x1xf32>
    %164 = arith.addf %157, %163 : vector<1x1xf32>
    %c5_i32 = arith.constant 5 : i32
    %165 = vector.broadcast %c5_i32 : i32 to vector<8x1xi32>
    %166 = arith.cmpi eq, %92, %165 : vector<8x1xi32>
    %167 = vector.shape_cast %164 : vector<1x1xf32> to vector<1x1xf32>
    %168 = vector.broadcast %167 : vector<1x1xf32> to vector<8x1xf32>
    %169 = arith.select %166, %168, %155 : vector<8x1xi1>, vector<8x1xf32>
    %170 = vector.extract_strided_slice %91 {offsets = [5, 127], sizes = [1, 1], strides = [1, 1]} : vector<8x128xf32> to vector<1x1xf32>
    %171 = arith.maximumf %164, %170 : vector<1x1xf32>
    %172 = arith.subf %164, %171 : vector<1x1xf32>
    %173 = math.exp %172 : vector<1x1xf32>
    %174 = arith.subf %170, %171 : vector<1x1xf32>
    %175 = math.exp %174 : vector<1x1xf32>
    %176 = arith.addf %173, %175 : vector<1x1xf32>
    %177 = math.log %176 : vector<1x1xf32>
    %178 = arith.addf %171, %177 : vector<1x1xf32>
    %c6_i32 = arith.constant 6 : i32
    %179 = vector.broadcast %c6_i32 : i32 to vector<8x1xi32>
    %180 = arith.cmpi eq, %92, %179 : vector<8x1xi32>
    %181 = vector.shape_cast %178 : vector<1x1xf32> to vector<1x1xf32>
    %182 = vector.broadcast %181 : vector<1x1xf32> to vector<8x1xf32>
    %183 = arith.select %180, %182, %169 : vector<8x1xi1>, vector<8x1xf32>
    %184 = vector.extract_strided_slice %91 {offsets = [6, 127], sizes = [1, 1], strides = [1, 1]} : vector<8x128xf32> to vector<1x1xf32>
    %185 = arith.maximumf %178, %184 : vector<1x1xf32>
    %186 = arith.subf %178, %185 : vector<1x1xf32>
    %187 = math.exp %186 : vector<1x1xf32>
    %188 = arith.subf %184, %185 : vector<1x1xf32>
    %189 = math.exp %188 : vector<1x1xf32>
    %190 = arith.addf %187, %189 : vector<1x1xf32>
    %191 = math.log %190 : vector<1x1xf32>
    %192 = arith.addf %185, %191 : vector<1x1xf32>
    %c7_i32 = arith.constant 7 : i32
    %193 = vector.broadcast %c7_i32 : i32 to vector<8x1xi32>
    %194 = arith.cmpi eq, %92, %193 : vector<8x1xi32>
    %195 = vector.shape_cast %192 : vector<1x1xf32> to vector<1x1xf32>
    %196 = vector.broadcast %195 : vector<1x1xf32> to vector<8x1xf32>
    %197 = arith.select %194, %196, %183 : vector<8x1xi1>, vector<8x1xf32>
    %198 = vector.extract_strided_slice %91 {offsets = [7, 127], sizes = [1, 1], strides = [1, 1]} : vector<8x128xf32> to vector<1x1xf32>
    %199 = arith.maximumf %192, %198 : vector<1x1xf32>
    %200 = arith.subf %192, %199 : vector<1x1xf32>
    %201 = math.exp %200 : vector<1x1xf32>
    %202 = arith.subf %198, %199 : vector<1x1xf32>
    %203 = math.exp %202 : vector<1x1xf32>
    %204 = arith.addf %201, %203 : vector<1x1xf32>
    %205 = math.log %204 : vector<1x1xf32>
    %206 = arith.addf %199, %205 : vector<1x1xf32>
    %c0_18 = arith.constant 0 : index
    %c0_19 = arith.constant 0 : index
    %207 = vector.load %arg3[%c0_18, %c0_19] : memref<1x1xf32, #tpu.memory_space<vmem>>, vector<1x1xf32>
    tpu.vector_store %arg3[%c0_18, %c0_19], %206 {strides = array<i32>} : memref<1x1xf32, #tpu.memory_space<vmem>>, vector<1x1xf32>,
    %208 = vector.broadcast %197 : vector<8x1xf32> to vector<8x128xf32>
    %209 = arith.maximumf %91, %208 : vector<8x128xf32>
    %210 = arith.subf %91, %209 : vector<8x128xf32>
    %211 = math.exp %210 : vector<8x128xf32>
    %212 = vector.broadcast %197 : vector<8x1xf32> to vector<8x128xf32>
    %213 = arith.subf %212, %209 : vector<8x128xf32>
    %214 = math.exp %213 : vector<8x128xf32>
    %215 = arith.addf %211, %214 : vector<8x128xf32>
    %216 = math.log %215 : vector<8x128xf32>
    %217 = arith.addf %209, %216 : vector<8x128xf32>
    %c0_20 = arith.constant 0 : index
    %c0_21 = arith.constant 0 : index
    %218 = vector.load %arg4[%c0_20, %c0_21] : memref<1x1xf32, #tpu.memory_space<vmem>>, vector<1x1xf32>
    %219 = arith.subf %4, %217 : vector<8x128xf32>
    %220 = arith.mulf %6, %219 : vector<8x128xf32>
    %221 = vector.shape_cast %220 : vector<8x128xf32> to vector<1x8x128xf32>
    %cst_22 = arith.constant dense<0.000000e+00> : vector<1xf32>
    %222 = vector.multi_reduction <add>, %221, %cst_22 [1, 2] : vector<1x8x128xf32> to vector<1xf32>
    %223 = vector.shape_cast %222 : vector<1xf32> to vector<1x1x1xf32>
    %224 = vector.extract %223[0, 0, 0] : f32 from vector<1x1x1xf32>
    %225 = vector.broadcast %224 : f32 to vector<1x1xf32>
    %226 = arith.addf %218, %225 : vector<1x1xf32>
    %c0_23 = arith.constant 0 : index
    %c0_24 = arith.constant 0 : index
    %227 = vector.load %arg4[%c0_23, %c0_24] : memref<1x1xf32, #tpu.memory_space<vmem>>, vector<1x1xf32>
    tpu.vector_store %arg4[%c0_23, %c0_24], %226 {strides = array<i32>} : memref<1x1xf32, #tpu.memory_space<vmem>>, vector<1x1xf32>,
    %c0_25 = arith.constant 0 : index
    %c0_26 = arith.constant 0 : index
    %228 = vector.load %arg5[%c0_25, %c0_26] : memref<1x1xf32, #tpu.memory_space<vmem>>, vector<1x1xf32>
    %229 = vector.shape_cast %6 : vector<8x128xf32> to vector<1x8x128xf32>
    %cst_27 = arith.constant dense<0.000000e+00> : vector<1xf32>
    %230 = vector.multi_reduction <add>, %229, %cst_27 [1, 2] : vector<1x8x128xf32> to vector<1xf32>
    %231 = vector.shape_cast %230 : vector<1xf32> to vector<1x1x1xf32>
    %232 = vector.extract %231[0, 0, 0] : f32 from vector<1x1x1xf32>
    %233 = vector.broadcast %232 : f32 to vector<1x1xf32>
    %234 = arith.addf %228, %233 : vector<1x1xf32>
    %c0_28 = arith.constant 0 : index
    %c0_29 = arith.constant 0 : index
    %235 = vector.load %arg5[%c0_28, %c0_29] : memref<1x1xf32, #tpu.memory_space<vmem>>, vector<1x1xf32>
    tpu.vector_store %arg5[%c0_28, %c0_29], %234 {strides = array<i32>} : memref<1x1xf32, #tpu.memory_space<vmem>>, vector<1x1xf32>,
    %c2_i32_30 = arith.constant 2 : i32
    %236 = arith.cmpi eq, %arg0, %c2_i32_30 : i32
    %237 = arith.extui %236 : i1 to i32
    %c0_i32_31 = arith.constant 0 : i32
    %238 = arith.cmpi ne, %237, %c0_i32_31 : i32
    scf.if %238 {
      %c0_32 = arith.constant 0 : index
      %c0_33 = arith.constant 0 : index
      %239 = vector.load %arg5[%c0_32, %c0_33] : memref<1x1xf32, #tpu.memory_space<vmem>>, vector<1x1xf32>
      %cst_34 = arith.constant 1.000000e+00 : f32
      %240 = vector.broadcast %cst_34 : f32 to vector<1x1xf32>
      %241 = arith.maximumf %239, %240 : vector<1x1xf32>
      %c0_35 = arith.constant 0 : index
      %c0_36 = arith.constant 0 : index
      %242 = vector.load %arg4[%c0_35, %c0_36] : memref<1x1xf32, #tpu.memory_space<vmem>>, vector<1x1xf32>
      %cst_37 = arith.constant 0.000000e+00 : f32
      %243 = vector.broadcast %cst_37 : f32 to vector<1x1xf32>
      %244 = arith.subf %243, %242 : vector<1x1xf32>
      %245 = arith.divf %244, %241 : vector<1x1xf32>
      %c0_38 = arith.constant 0 : index
      %c0_39 = arith.constant 0 : index
      %246 = vector.load %arg2[%c0_38, %c0_39] : memref<1x1xf32, #tpu.memory_space<vmem>>, vector<1x1xf32>
      tpu.vector_store %arg2[%c0_38, %c0_39], %245 {strides = array<i32>} : memref<1x1xf32, #tpu.memory_space<vmem>>, vector<1x1xf32>,
    } else {
    }
    return
  }
  func.func @transform_0(%arg0: i32) -> (i32, i32, i32) {
    %c0_i32 = arith.constant 0 : i32
    %c0_i32_0 = arith.constant 0 : i32
    %c0_i32_1 = arith.constant 0 : i32
    return %c0_i32, %arg0, %c0_i32_0 : i32, i32, i32
  }
  func.func @transform_1(%arg0: i32) -> (i32, i32) {
    %c0_i32 = arith.constant 0 : i32
    %c0_i32_0 = arith.constant 0 : i32
    %c0_i32_1 = arith.constant 0 : i32
    return %c0_i32, %c0_i32_0 : i32, i32
  }
}

</mosaic_0001>

<bundles_post_ra>
// kernel: tpu_custom_call.1
= control target key start
LH: loop header
LB: loop body
LE: loop exit
PB: predicated region body
PF: predicated region fallthrough
CT: control target
= control target key end

     0   :  { %6 = vsyncpa [#allocation6], 0  ;;  %s1363_s0 = inlined_call_operand.hbm [shape: f32[2,24,128], index: 0, kind: input, shape index: {}]   ;;  %s1364_s1 = inlined_call_operand.hbm [shape: f32[1,1], index: 1, kind: output, shape index: {}]  }
   0x1   :  { %8 = vsyncpa [#allocation6 + $0x1], 0 }
   0x2   :  { %9 = vsyncpa [#allocation7], 0  ;;  %s1104_s6 = smov 0   ;;  %s1106_s7 = smov 0  }
   0x3   :  { %s1108_s8 = smov 0   ;;  %s1110_s9 = smov 0  }
   0x4 LB: > { %s1123_s10 = sadd.s32 4294967295, %s1075_s9   ;;  %s1126_s11 = sadd.s32 1, %s1075_s9   ;;  %s1075_s9 = sphi %s1110_s9, %s1370_s9   ;;  %s1071_s8 = sphi %s1108_s8, %s1369_s8   ;;  %s1067_s7 = sphi %s1106_s7, %s1368_s7   ;;  %s1063_s6 = sphi %s1104_s6, %s1367_s6  }
   0x5   : > { %s19_s12 = ssub.s32 %s1075_s9, %s1126_s11  ;;  %s22_s13 = sadd.s32 1, %s1071_s8 }
   0x6   : > { %p20_p0 = scmp.eq.s32.totalorder %s19_s12, 0  ;;  %p29_p1 = scmp.ne.s32.totalorder %s1071_s8, %s1067_s7 }
   0x7   : > { %p30_p2 = scmp.eq.s32.totalorder %s1075_s9, 0  ;;  %p35_p3 = scmp.ne.s32.totalorder %s1067_s7, %s1063_s6 }
   0x8   : > { %s1136_s14 = scalar_select %p20_p0, %s1071_s8, %s22_s13  }
   0x9   : > { %p31_p4 = por %p30_p2, %p29_p1  ;;  %p36_p5 = scmp.eq.s32.totalorder %s1123_s10, 0 }
   0xa   : > { %p831_p6 = scmp.lt.s32.totalorder %s1075_s9, 3  ;;  %s80_s16 = sand.u32 1, %s1071_s8  }
   0xb   : > { %p1140_p7 = por %p36_p5, %p35_p3  ;;  %s806_s17 = sshll.u32 %s80_s16, 4 }
   0xc   : > { %s807_s18 = sshll.u32 %s1075_s9, 7  ;;  %s84_s22 = scalar_lea.vmem [#allocation5], %s806_s17 }
   0xd   : > { %s1149_s21 = scalar_lea.hbm %s1363_s0, %s807_s18  ;;  %s90_s23 = sshll.u32 %s84_s22, 4  ;;  %s1151_s23 = int_to_ptr.vmem [resolvable:$true] %s90_s23 }
   0xe   : > { %p1153_p8 = pnand %p831_p6, %p31_p4  ;;  %s1157_s25 = scalar_lea.sflag [#allocation6], %s80_s16 }
   0xf   : > { %s981_s26 = scalar_lea.hbm %s1149_s21, 256  ;;  %s986_s29 = scalar_lea.hbm %s1363_s0, 768 }
  0x10   : > { %p982_p9 = scmp.ne.s32.totalorder %s1149_s21, %s981_s26  ;;  %p983_p10 = pneg %p1153_p8 }
  0x11   : > { %p987_p13 = scmp.lt.u32.totalorder %s1149_s21, %s1363_s0  ;;  %p988_p0 = scmp.lt.u32.totalorder %s986_s29, %s981_s26 }
  0x12   : > { %p984_p11 = pnand %p983_p10, %p982_p9  ;;  %p990_p2 = scmp.lt.u32.totalorder %s981_s26, %s1149_s21 }
  0x13   : > { %p989_p1 = por %p988_p0, %p987_p13 }
  0x14   : > { %p985_p12 = pneg %p984_p11 }
  0x15   : > { %p991_p3 = por %p990_p2, %p989_p1 }
  0x17   : > { %p992_p4 = pnand %p991_p3, %p985_p12 }
  0x19   : > { %995 = shalt.err (!%p992_p4)
}
  0x1a   : > { %s996_s3 = scalar_lea.vmem %s1151_s23, 256  ;;  %s1077_s4 = smov [#allocation5]  }
  0x1b   : > { %p997_p5 = scmp.ne.s32.totalorder %s1151_s23, %s996_s3  ;;  %s1001_s5 = sshll.u32 %s1077_s4, 4  ;;  %s1002_s5 = int_to_ptr.vmem [resolvable:$false] %s1001_s5 }
  0x1c   : > { %s1003_s6 = scalar_lea.vmem %s1002_s5, 512  ;;  %p1004_p11 = scmp.lt.s32.totalorder %s1151_s23, %s1002_s5 }
  0x1d   : > { %p999_p6 = pnand %p997_p5, %p983_p10  ;;  %p1005_p13 = scmp.lt.s32.totalorder %s1003_s6, %s996_s3 }
  0x1f   : > { %p1000_p9 = pneg %p999_p6  ;;  %p1006_p0 = por %p1005_p13, %p1004_p11 }
  0x21   : > { %p1007_p1 = pnand %p1006_p0, %p1000_p9 }
  0x23   : > { %1010 = shalt.err (!%p1007_p1)
}
  0x24   : > { %s1078_s12 = smov 384   ;;  %s1079_s13 = smov 128  }
  0x25   : > { %s1080_s16 = smov 8   ;;  %p808_p10 = scmp.ge.s32.totalorder %s1075_s9, 1 }
  0x26   : > { %830 = dma.hbm_to_vmem [thread:$0]  (!%p1153_p8), %s1149_s21, 256, %s1151_s23, %s1157_s25, %s1078_s12, %s1079_s13, %s1080_s16  }
  0x27   : > { %p98_p12 = scmp.lt.s32.totalorder %s1075_s9, 4 }
  0x29   : > { %p99_p2 = pnand %p808_p10, %p98_p12 }
  0x2a   : > { %s104_s17 = sand.u32 (!%p99_p2), 1, %s1067_s7  }
  0x2b   : > { %102 = sbr.rel (%p99_p2) target bundleno = 3572 (0xdf4), region = 24  ;;  %s1188_s18 = sshll.u32 (!%p99_p2), %s104_s17, 4 }
  0x2c   : > { %s105_s19 = scalar_lea.sflag (!%p99_p2), [#allocation6], %s104_s17  ;;  %s108_s20 = scalar_lea.vmem (!%p99_p2), [#allocation5], %s1188_s18 }
  0x32   : > { %1054 = dma.done.wait (%p1140_p7), %s105_s19, 256  }
  0x33   : > { %1056 = vsyncadd (%p1140_p7), %s105_s19, 4294967040  ;;  %p810_p3 = scmp.ne.s32.totalorder %s1123_s10, 0 }
  0x34   : > { %vm126_vm0 = vcmask (!%p810_p3), 0   ;;  %v1081_v0 = vmov (!%p810_p3), -1e+30   ;;  %v1082_v1 = vmov (!%p810_p3), 0.0  }
  0x35   : > { %125 = sbr.rel (%p810_p3) target bundleno = 60 (0x3c), region = 32  ;;  %127 = vst.msk [vmem:[#allocation2] sm:$0x1] (!%p810_p3), %vm126_vm0, %v1081_v0  ;;  %128 = vst.msk [vmem:[#allocation3] sm:$0x1] (!%p810_p3), %vm126_vm0, %v1082_v1 }
  0x36   : > { %129 = vst.msk [vmem:[#allocation4] sm:$0x1] (!%p810_p3), %vm126_vm0, %v1082_v1 }
  0x3c PF: > { %v1198_v2 = vld [vmem:[%s108_s20] sm:$0xff]  ;;  %s1083_s9 = smov 1   ;;  %v133_v12 = vlaneseq  ;;  %s1084_s15 = smov 2   ;;  %vm689_vm0 = vcmask 0  }
  0x3d   : > { %135 = vrot.lane.b32.xlu0 %v1198_v2, %s1083_s9  ;;  %s1085_s21 = smov 4   ;;  %s1086_s22 = smov 8  }
  0x3e   : > { %v1205_v13 = vand.u32 127, %v133_v12  ;;  %s1087_s23 = smov 16   ;;  %s1088_s24 = smov 32  }
  0x3f   : > { %s1089_s25 = smov 64   ;;  %s1091_s26 = smov 127  }
  0x40   : > { %vm137_vm1 = vcmp.ge.s32.totalorder %v1205_v13, 1  ;;  %vm152_vm2 = vcmp.ge.s32.totalorder %v1205_v13, 2  ;;  %vm167_vm3 = vcmp.ge.s32.totalorder %v1205_v13, 4  ;;  %vm182_vm4 = vcmp.ge.s32.totalorder %v1205_v13, 8  ;;  %p812_p7 = scmp.ne.s32.totalorder %s1123_s10, 2 }
  0x41   : > { %vm197_vm5 = vcmp.ge.s32.totalorder %v1205_v13, 16  ;;  %vm212_vm6 = vcmp.ge.s32.totalorder %v1205_v13, 32  ;;  %vm227_vm7 = vcmp.ge.s32.totalorder %v1205_v13, 64 }
  0xaf   : > { %v136_v3 = vpop.permute.xlu0 %135 }
  0xb0   : > { %v138_v4 = vmax.f32 %v1198_v2, %v136_v3 }
  0xb2   : > { %v139_v5 = vsub.f32 %v1198_v2, %v138_v4  ;;  %v142_v6 = vsub.f32 %v136_v3, %v138_v4 }
  0xb4   : > { %v140_v7 = vmul.f32 1.442695, %v139_v5  ;;  %v143_v8 = vmul.f32 1.442695, %v142_v6 }
  0xb6   : > { %883 = vpow2.f32 %v140_v7 }
  0xb7   : > { %885 = vpow2.f32 %v143_v8 }
  0xc0   : > { %v884_v9 = vpop.eup %883 }
  0xc1   : > { %v886_v10 = vpop.eup %885 }
  0xc2   : > { %v145_v11 = vadd.f32 %v886_v10, %v884_v9 }
  0xc4   : > { %887 = vlog2.f32 %v145_v11 }
  0xce   : > { %v888_v14 = vpop.eup %887 }
  0xcf   : > { %v147_v15 = vmul.f32 0.6931472, %v888_v14 }
  0xd1   : > { %v148_v16 = vadd.f32 %v147_v15, %v138_v4 }
  0xd3   : > { %v149_v17 = vsel %vm137_vm1, %v148_v16, %v1198_v2 }
  0xd4   : > { %150 = vrot.lane.b32.xlu0 %v149_v17, %s1084_s15 }
 0x146   : > { %v151_v18 = vpop.permute.xlu0 %150 }
 0x147   : > { %v153_v19 = vmax.f32 %v149_v17, %v151_v18 }
 0x149   : > { %v154_v20 = vsub.f32 %v149_v17, %v153_v19  ;;  %v157_v21 = vsub.f32 %v151_v18, %v153_v19 }
 0x14b   : > { %v155_v22 = vmul.f32 1.442695, %v154_v20  ;;  %v158_v23 = vmul.f32 1.442695, %v157_v21 }
 0x14d   : > { %889 = vpow2.f32 %v155_v22 }
 0x14e   : > { %891 = vpow2.f32 %v158_v23 }
 0x157   : > { %v890_v24 = vpop.eup %889 }
 0x158   : > { %v892_v25 = vpop.eup %891 }
 0x159   : > { %v160_v26 = vadd.f32 %v892_v25, %v890_v24 }
 0x15b   : > { %893 = vlog2.f32 %v160_v26 }
 0x165   : > { %v894_v27 = vpop.eup %893 }
 0x166   : > { %v162_v28 = vmul.f32 0.6931472, %v894_v27 }
 0x168   : > { %v163_v29 = vadd.f32 %v162_v28, %v153_v19 }
 0x16a   : > { %v164_v30 = vsel %vm152_vm2, %v163_v29, %v149_v17 }
 0x16b   : > { %165 = vrot.lane.b32.xlu1 %v164_v30, %s1085_s21 }
 0x1dd   : > { %v166_v31 = vpop.permute.xlu1 %165 }
 0x1de   : > { %v168_v32 = vmax.f32 %v164_v30, %v166_v31 }
 0x1e0   : > { %v169_v33 = vsub.f32 %v164_v30, %v168_v32  ;;  %v172_v34 = vsub.f32 %v166_v31, %v168_v32  ;;  %v1090_v31 = vmov 1966171168  }
 0x1e2   : > { %v170_v35 = vmul.f32 1.442695, %v169_v33  ;;  %v173_v36 = vmul.f32 1.442695, %v172_v34  ;;  %v1215_v33 = vshrl.u32 %v133_v12, 7 }
 0x1e3   : > { %v242_v12 = vld [vmem:[#allocation2] sm:$0x1] }
 0x1e4   : > { %895 = vpow2.f32 %v170_v35  ;;  %vm243_vm8 = vcmp.eq.s32.totalorder %v1215_v33, 0  ;;  %vm306_vm9 = vcmp.eq.s32.totalorder %v1215_v33, 1  ;;  %vm363_vm10 = vcmp.eq.s32.totalorder %v1215_v33, 2 }
 0x1e5   : > { %897 = vpow2.f32 %v173_v36  ;;  %vm413_vm11 = vcmp.eq.s32.totalorder %v1215_v33, 3  ;;  %vm464_vm12 = vcmp.eq.s32.totalorder %v1215_v33, 4  ;;  %vm528_vm13 = vcmp.eq.s32.totalorder %v1215_v33, 5 }
 0x1e6   : > { %vm586_vm14 = vcmp.eq.s32.totalorder %v1215_v33, 6  ;;  %vm637_vm15 = vcmp.eq.s32.totalorder %v1215_v33, 7 }
 0x1ee   : > { %v896_v37 = vpop.eup %895 }
 0x1ef   : > { %v898_v38 = vpop.eup %897 }
 0x1f0   : > { %v175_v39 = vadd.f32 %v898_v38, %v896_v37 }
 0x1f2   : > { %899 = vlog2.f32 %v175_v39 }
 0x1fc   : > { %v900_v40 = vpop.eup %899 }
 0x1fd   : > { %v177_v41 = vmul.f32 0.6931472, %v900_v40 }
 0x1ff   : > { %v178_v42 = vadd.f32 %v177_v41, %v168_v32  ;;  %v253_v32 = vunpack.c.l.s4 %v1090_v31 }
 0x201   : > { %v179_v43 = vsel %vm167_vm3, %v178_v42, %v164_v30  ;;  %v254_v34 = vunpack.c.0.s8 %v253_v32  ;;  %v1228_v42 = vsub.s32 0, %v1215_v33 }
 0x202   : > { %180 = vrot.lane.b32.xlu1 %v179_v43, %s1086_s22 }
 0x203   : > { %v1218_v37 = vsub.s32 %v254_v34, %v1215_v33 }
 0x274   : > { %v181_v44 = vpop.permute.xlu1 %180 }
 0x275   : > { %v183_v45 = vmax.f32 %v179_v43, %v181_v44 }
 0x277   : > { %v184_v46 = vsub.f32 %v179_v43, %v183_v45  ;;  %v187_v47 = vsub.f32 %v181_v44, %v183_v45 }
 0x279   : > { %v185_v48 = vmul.f32 1.442695, %v184_v46  ;;  %v188_v49 = vmul.f32 1.442695, %v187_v47 }
 0x27b   : > { %901 = vpow2.f32 %v185_v48 }
 0x27c   : > { %903 = vpow2.f32 %v188_v49 }
 0x285   : > { %v902_v50 = vpop.eup %901 }
 0x286   : > { %v904_v51 = vpop.eup %903 }
 0x287   : > { %v190_v52 = vadd.f32 %v904_v51, %v902_v50 }
 0x289   : > { %905 = vlog2.f32 %v190_v52 }
 0x293   : > { %v906_v53 = vpop.eup %905 }
 0x294   : > { %v192_v54 = vmul.f32 0.6931472, %v906_v53 }
 0x296   : > { %v193_v55 = vadd.f32 %v192_v54, %v183_v45 }
 0x298   : > { %v194_v56 = vsel %vm182_vm4, %v193_v55, %v179_v43 }
 0x299   : > { %195 = vrot.lane.b32.xlu0 %v194_v56, %s1087_s23 }
 0x30b   : > { %v196_v57 = vpop.permute.xlu0 %195 }
 0x30c   : > { %v198_v58 = vmax.f32 %v194_v56, %v196_v57 }
 0x30e   : > { %v199_v59 = vsub.f32 %v194_v56, %v198_v58  ;;  %v202_v60 = vsub.f32 %v196_v57, %v198_v58 }
 0x310   : > { %v200_v61 = vmul.f32 1.442695, %v199_v59  ;;  %v203_v62 = vmul.f32 1.442695, %v202_v60 }
 0x312   : > { %907 = vpow2.f32 %v200_v61 }
 0x313   : > { %909 = vpow2.f32 %v203_v62 }
 0x31c   : > { %v908_v63 = vpop.eup %907 }
 0x31d   : > { %v910_v0 = vpop.eup %909 }
 0x31e   : > { %v205_v1 = vadd.f32 %v910_v0, %v908_v63 }
 0x320   : > { %911 = vlog2.f32 %v205_v1 }
 0x32a   : > { %v912_v3 = vpop.eup %911 }
 0x32b   : > { %v207_v4 = vmul.f32 0.6931472, %v912_v3 }
 0x32d   : > { %v208_v5 = vadd.f32 %v207_v4, %v198_v58 }
 0x32f   : > { %v209_v6 = vsel %vm197_vm5, %v208_v5, %v194_v56 }
 0x330   : > { %210 = vrot.lane.b32.xlu1 %v209_v6, %s1088_s24 }
 0x3a2   : > { %v211_v7 = vpop.permute.xlu1 %210 }
 0x3a3   : > { %v213_v8 = vmax.f32 %v209_v6, %v211_v7 }
 0x3a5   : > { %v214_v9 = vsub.f32 %v209_v6, %v213_v8  ;;  %v217_v10 = vsub.f32 %v211_v7, %v213_v8 }
 0x3a7   : > { %v215_v11 = vmul.f32 1.442695, %v214_v9  ;;  %v218_v14 = vmul.f32 1.442695, %v217_v10 }
 0x3a9   : > { %913 = vpow2.f32 %v215_v11 }
 0x3aa   : > { %915 = vpow2.f32 %v218_v14 }
 0x3b3   : > { %v914_v15 = vpop.eup %913 }
 0x3b4   : > { %v916_v16 = vpop.eup %915 }
 0x3b5   : > { %v220_v17 = vadd.f32 %v916_v16, %v914_v15  ;;  %v248_v16 = vrot.slane %v242_v12, %v1228_v42 }
 0x3b7   : > { %917 = vlog2.f32 %v220_v17 }
 0x3c1   : > { %v918_v18 = vpop.eup %917 }
 0x3c2   : > { %v222_v19 = vmul.f32 0.6931472, %v918_v18 }
 0x3c4   : > { %v223_v20 = vadd.f32 %v222_v19, %v213_v8 }
 0x3c6   : > { %v224_v21 = vsel %vm212_vm6, %v223_v20, %v209_v6  ;;  %v250_v20 = vsel %vm243_vm8, %v248_v16, 0.0 }
 0x3c7   : > { %225 = vrot.lane.b32.xlu0 %v224_v21, %s1089_s25 }
 0x439   : > { %v226_v22 = vpop.permute.xlu0 %225 }
 0x43a   : > { %v228_v23 = vmax.f32 %v224_v21, %v226_v22 }
 0x43c   : > { %v229_v24 = vsub.f32 %v224_v21, %v228_v23  ;;  %v232_v25 = vsub.f32 %v226_v22, %v228_v23 }
 0x43e   : > { %v230_v26 = vmul.f32 1.442695, %v229_v24  ;;  %v233_v27 = vmul.f32 1.442695, %v232_v25 }
 0x440   : > { %919 = vpow2.f32 %v230_v26 }
 0x441   : > { %921 = vpow2.f32 %v233_v27 }
 0x44a   : > { %v920_v28 = vpop.eup %919 }
 0x44b   : > { %v922_v29 = vpop.eup %921 }
 0x44c   : > { %v235_v30 = vadd.f32 %v922_v29, %v920_v28 }
 0x44e   : > { %923 = vlog2.f32 %v235_v30 }
 0x458   : > { %v924_v35 = vpop.eup %923 }
 0x459   : > { %v237_v36 = vmul.f32 0.6931472, %v924_v35 }
 0x45b   : > { %v238_v38 = vadd.f32 %v237_v36, %v228_v23 }
 0x45d   : > { %v1221_v39 = vsel %vm227_vm7, %v238_v38, %v224_v21 }
 0x45e   : > { %v258_v40 = vrot.slane %v1221_v39, %v1218_v37 }
 0x460   : > { %v265_v41 = vrot.slane %v258_v40, %v1218_v37  ;;  %v314_v46 = vcombine.high %v258_v40, %v258_v40 }
 0x462   : > { %266 = vrot.lane.b32.xlu1 %v265_v41, %s1083_s9  ;;  %v321_v13 = vrot.slane %v314_v46, %v1218_v37  ;;  %v371_v0 = vcombine.high %v265_v41, %v265_v41 }
 0x464   : > { %v421_v28 = vcombine.high %v321_v13, %v321_v13 }
 0x4d4   : > { %v267_v43 = vpop.permute.xlu1 %266 }
 0x4d5   : > { %v269_v44 = vmax.f32 %v242_v12, %v267_v43 }
 0x4d7   : > { %v277_v45 = vrot.slane %v269_v44, %v1228_v42  ;;  %v270_v53 = vsub.f32 %v242_v12, %v269_v44 }
 0x4d9   : > { %278 = vrot.lane.b32.xlu0 %v277_v45, %s1091_s26  ;;  %v271_v54 = vmul.f32 1.442695, %v270_v53 }
 0x4dd   : > { %322 = vrot.lane.b32.xlu0 %v321_v13, %s1083_s9  ;;  %v472_v13 = vcombine.high %v1221_v39, %v1221_v39 }
 0x54b   : > { %v279_v47 = vpop.permute.xlu0 %278 }
 0x54c   : > { %v281_v48 = vsub.f32 %v1221_v39, %v279_v47 }
 0x54e   : > { %v282_v49 = vmul.f32 1.442695, %v281_v48 }
 0x54f   : > { %v323_v61 = vpop.permute.xlu0 %322 }
 0x550   : > { %925 = vpow2.f32 %v282_v49 }
 0x551   : > { %927 = vpow2.f32 %v271_v54 }
 0x55a   : > { %v926_v50 = vpop.eup %925 }
 0x55b   : > { %v291_v51 = vrot.slane %v926_v50, %v1218_v37  ;;  %v928_v55 = vpop.eup %927 }
 0x55d   : > { %v298_v52 = vrot.slane %v291_v51, %v1218_v37  ;;  %v479_v51 = vrot.slane %v472_v13, %v1218_v37 }
 0x55f   : > { %299 = vrot.lane.b32.xlu1 %v298_v52, %s1083_s9  ;;  %v486_v53 = vrot.slane %v479_v51, %v1218_v37 }
 0x5d1   : > { %v300_v56 = vpop.permute.xlu1 %299 }
 0x5d2   : > { %v302_v57 = vadd.f32 %v928_v55, %v300_v56 }
 0x5d4   : > { %929 = vlog2.f32 %v302_v57 }
 0x5de   : > { %v930_v58 = vpop.eup %929 }
 0x5df   : > { %v304_v59 = vmul.f32 0.6931472, %v930_v58 }
 0x5e1   : > { %v305_v60 = vadd.f32 %v304_v59, %v269_v44 }
 0x5e3   : > { %v325_v62 = vmax.f32 %v305_v60, %v323_v61  ;;  %v311_v19 = vrot.slane %v305_v60, %v1228_v42 }
 0x5e5   : > { %v333_v63 = vrot.slane %v325_v62, %v1228_v42  ;;  %v326_v9 = vsub.f32 %v305_v60, %v325_v62  ;;  %v313_v25 = vsel %vm306_vm9, %v311_v19, %v250_v20 }
 0x5e7   : > { %334 = vrot.lane.b32.xlu1 %v333_v63, %s1091_s26  ;;  %v327_v10 = vmul.f32 1.442695, %v326_v9 }
 0x5eb   : > { %372 = vrot.lane.b32.xlu1 %v371_v0, %s1083_s9 }
 0x659   : > { %v335_v1 = vpop.permute.xlu1 %334 }
 0x65a   : > { %v337_v3 = vsub.f32 %v1221_v39, %v335_v1 }
 0x65c   : > { %v338_v4 = vmul.f32 1.442695, %v337_v3 }
 0x65d   : > { %v373_v22 = vpop.permute.xlu1 %372 }
 0x65e   : > { %931 = vpow2.f32 %v338_v4 }
 0x65f   : > { %933 = vpow2.f32 %v327_v10 }
 0x668   : > { %v932_v5 = vpop.eup %931 }
 0x669   : > { %v347_v6 = vrot.slane %v932_v5, %v1218_v37  ;;  %v934_v11 = vpop.eup %933 }
 0x66b   : > { %v348_v7 = vcombine.high %v347_v6, %v347_v6 }
 0x66d   : > { %v355_v8 = vrot.slane %v348_v7, %v1218_v37 }
 0x66f   : > { %356 = vrot.lane.b32.xlu0 %v355_v8, %s1083_s9 }
 0x6e1   : > { %v357_v14 = vpop.permute.xlu0 %356 }
 0x6e2   : > { %v359_v15 = vadd.f32 %v934_v11, %v357_v14  ;;  %v536_v11 = vcombine.high %v479_v51, %v479_v51 }
 0x6e4   : > { %935 = vlog2.f32 %v359_v15  ;;  %v1276_v15 = vrot.slane %v536_v11, %v1218_v37 }
 0x6ee   : > { %v936_v17 = vpop.eup %935 }
 0x6ef   : > { %v361_v18 = vmul.f32 0.6931472, %v936_v17 }
 0x6f1   : > { %v362_v21 = vadd.f32 %v361_v18, %v325_v62 }
 0x6f3   : > { %v368_v23 = vrot.slane %v362_v21, %v1228_v42  ;;  %v375_v24 = vmax.f32 %v362_v21, %v373_v22 }
 0x6f5   : > { %v383_v26 = vrot.slane %v375_v24, %v1228_v42  ;;  %v370_v27 = vsel %vm363_vm10, %v368_v23, %v313_v25  ;;  %v376_v38 = vsub.f32 %v362_v21, %v375_v24 }
 0x6f7   : > { %384 = vrot.lane.b32.xlu0 %v383_v26, %s1091_s26  ;;  %v377_v40 = vmul.f32 1.442695, %v376_v38  ;;  %v594_v38 = vcombine.high %v486_v53, %v486_v53 }
 0x6fb   : > { %422 = vrot.lane.b32.xlu0 %v421_v28, %s1083_s9 }
 0x769   : > { %v385_v29 = vpop.permute.xlu0 %384 }
 0x76a   : > { %v387_v30 = vsub.f32 %v1221_v39, %v385_v29 }
 0x76c   : > { %v388_v31 = vmul.f32 1.442695, %v387_v30 }
 0x76d   : > { %v423_v47 = vpop.permute.xlu0 %422 }
 0x76e   : > { %937 = vpow2.f32 %v388_v31 }
 0x76f   : > { %939 = vpow2.f32 %v377_v40 }
 0x778   : > { %v938_v32 = vpop.eup %937 }
 0x779   : > { %v397_v34 = vrot.slane %v938_v32, %v1218_v37  ;;  %v940_v41 = vpop.eup %939 }
 0x77b   : > { %v404_v35 = vrot.slane %v397_v34, %v1218_v37 }
 0x77d   : > { %v405_v36 = vcombine.high %v404_v35, %v404_v35 }
 0x77f   : > { %406 = vrot.lane.b32.xlu1 %v405_v36, %s1083_s9 }
 0x7f1   : > { %v407_v12 = vpop.permute.xlu1 %406 }
 0x7f2   : > { %v409_v43 = vadd.f32 %v940_v41, %v407_v12 }
 0x7f4   : > { %941 = vlog2.f32 %v409_v43 }
 0x7fe   : > { %v942_v44 = vpop.eup %941 }
 0x7ff   : > { %v411_v45 = vmul.f32 0.6931472, %v942_v44 }
 0x801   : > { %v412_v46 = vadd.f32 %v411_v45, %v375_v24 }
 0x803   : > { %v418_v48 = vrot.slane %v412_v46, %v1228_v42  ;;  %v425_v49 = vmax.f32 %v412_v46, %v423_v47 }
 0x805   : > { %v433_v50 = vrot.slane %v425_v49, %v1228_v42  ;;  %v420_v52 = vsel %vm413_vm11, %v418_v48, %v370_v27  ;;  %v426_v62 = vsub.f32 %v412_v46, %v425_v49 }
 0x807   : > { %434 = vrot.lane.b32.xlu1 %v433_v50, %s1091_s26  ;;  %v427_v63 = vmul.f32 1.442695, %v426_v62 }
 0x80b   : > { %487 = vrot.lane.b32.xlu1 %v486_v53, %s1083_s9 }
 0x879   : > { %v435_v54 = vpop.permute.xlu1 %434 }
 0x87a   : > { %v437_v55 = vsub.f32 %v1221_v39, %v435_v54 }
 0x87c   : > { %v438_v56 = vmul.f32 1.442695, %v437_v55 }
 0x87d   : > { %v488_v7 = vpop.permute.xlu1 %487 }
 0x87e   : > { %943 = vpow2.f32 %v438_v56 }
 0x87f   : > { %945 = vpow2.f32 %v427_v63 }
 0x888   : > { %v944_v57 = vpop.eup %943 }
 0x889   : > { %v447_v58 = vrot.slane %v944_v57, %v1218_v37  ;;  %v946_v0 = vpop.eup %945 }
 0x88b   : > { %v448_v59 = vcombine.high %v447_v58, %v447_v58 }
 0x88d   : > { %v455_v60 = vrot.slane %v448_v59, %v1218_v37 }
 0x88f   : > { %v456_v61 = vcombine.high %v455_v60, %v455_v60 }
 0x891   : > { %457 = vrot.lane.b32.xlu0 %v456_v61, %s1083_s9 }
 0x903   : > { %v458_v1 = vpop.permute.xlu0 %457 }
 0x904   : > { %v460_v3 = vadd.f32 %v946_v0, %v458_v1 }
 0x906   : > { %947 = vlog2.f32 %v460_v3 }
 0x910   : > { %v948_v4 = vpop.eup %947 }
 0x911   : > { %v462_v5 = vmul.f32 0.6931472, %v948_v4 }
 0x913   : > { %v463_v6 = vadd.f32 %v462_v5, %v425_v49  ;;  %v645_v5 = vcombine.high %v1276_v15, %v1276_v15 }
 0x915   : > { %v469_v8 = vrot.slane %v463_v6, %v1228_v42  ;;  %v490_v9 = vmax.f32 %v463_v6, %v488_v7 }
 0x917   : > { %v498_v10 = vrot.slane %v490_v9, %v1228_v42  ;;  %v471_v14 = vsel %vm464_vm12, %v469_v8, %v420_v52  ;;  %v491_v23 = vsub.f32 %v463_v6, %v490_v9  ;;  %v1092_v6 = vmov 0  }
 0x918   : > { %882 = vset.pattern.permute.xlu0 %v1092_v6 }
 0x919   : > { %499 = vrot.lane.b32.xlu0 %v498_v10, %s1091_s26  ;;  %v492_v24 = vmul.f32 1.442695, %v491_v23 }
 0x91d   : > { %544 = vrot.lane.b32.xlu0 %v1276_v15, %s1083_s9 }
 0x98b   : > { %v500_v16 = vpop.permute.xlu0 %499 }
 0x98c   : > { %v502_v17 = vsub.f32 %v1221_v39, %v500_v16 }
 0x98e   : > { %v503_v18 = vmul.f32 1.442695, %v502_v17 }
 0x98f   : > { %v545_v31 = vpop.permute.xlu0 %544 }
 0x990   : > { %949 = vpow2.f32 %v503_v18 }
 0x991   : > { %951 = vpow2.f32 %v492_v24 }
 0x99a   : > { %v950_v19 = vpop.eup %949 }
 0x99b   : > { %v506_v20 = vcombine.high %v950_v19, %v950_v19  ;;  %v952_v25 = vpop.eup %951 }
 0x99d   : > { %v513_v21 = vrot.slane %v506_v20, %v1218_v37 }
 0x99f   : > { %v520_v22 = vrot.slane %v513_v21, %v1218_v37 }
 0x9a1   : > { %521 = vrot.lane.b32.xlu1 %v520_v22, %s1083_s9  ;;  %v811_v22 = vld [vmem:[%s108_s20 + $0x8] sm:$0xff] }
 0xa13   : > { %v522_v26 = vpop.permute.xlu1 %521 }
 0xa14   : > { %v524_v27 = vadd.f32 %v952_v25, %v522_v26 }
 0xa16   : > { %953 = vlog2.f32 %v524_v27 }
 0xa20   : > { %v954_v28 = vpop.eup %953 }
 0xa21   : > { %v526_v29 = vmul.f32 0.6931472, %v954_v28 }
 0xa23   : > { %v527_v30 = vadd.f32 %v526_v29, %v490_v9 }
 0xa25   : > { %v533_v32 = vrot.slane %v527_v30, %v1228_v42  ;;  %v547_v34 = vmax.f32 %v527_v30, %v545_v31 }
 0xa27   : > { %v555_v35 = vrot.slane %v547_v34, %v1228_v42  ;;  %v535_v36 = vsel %vm528_vm13, %v533_v32, %v471_v14  ;;  %v548_v47 = vsub.f32 %v527_v30, %v547_v34 }
 0xa29   : > { %556 = vrot.lane.b32.xlu1 %v555_v35, %s1091_s26  ;;  %v549_v48 = vmul.f32 1.442695, %v548_v47 }
 0xa2d   : > { %595 = vrot.lane.b32.xlu1 %v594_v38, %s1083_s9 }
 0xa9b   : > { %v557_v40 = vpop.permute.xlu1 %556 }
 0xa9c   : > { %v559_v41 = vsub.f32 %v1221_v39, %v557_v40 }
 0xa9e   : > { %v560_v12 = vmul.f32 1.442695, %v559_v41 }
 0xa9f   : > { %v596_v55 = vpop.permute.xlu1 %595 }
 0xaa0   : > { %955 = vpow2.f32 %v560_v12 }
 0xaa1   : > { %957 = vpow2.f32 %v549_v48 }
 0xaaa   : > { %v956_v43 = vpop.eup %955 }
 0xaab   : > { %v563_v44 = vcombine.high %v956_v43, %v956_v43  ;;  %v958_v49 = vpop.eup %957 }
 0xaad   : > { %v570_v45 = vrot.slane %v563_v44, %v1218_v37 }
 0xaaf   : > { %v571_v46 = vcombine.high %v570_v45, %v570_v45 }
 0xab1   : > { %v578_v13 = vrot.slane %v571_v46, %v1218_v37 }
 0xab3   : > { %579 = vrot.lane.b32.xlu0 %v578_v13, %s1083_s9 }
 0xb25   : > { %v580_v50 = vpop.permute.xlu0 %579 }
 0xb26   : > { %v582_v51 = vadd.f32 %v958_v49, %v580_v50 }
 0xb28   : > { %959 = vlog2.f32 %v582_v51 }
 0xb32   : > { %v960_v52 = vpop.eup %959 }
 0xb33   : > { %v584_v53 = vmul.f32 0.6931472, %v960_v52 }
 0xb35   : > { %v585_v54 = vadd.f32 %v584_v53, %v547_v34 }
 0xb37   : > { %v598_v56 = vmax.f32 %v585_v54, %v596_v55  ;;  %v591_v57 = vrot.slane %v585_v54, %v1228_v42 }
 0xb39   : > { %v606_v58 = vrot.slane %v598_v56, %v1228_v42  ;;  %v593_v59 = vsel %vm586_vm14, %v591_v57, %v535_v36  ;;  %v599_v7 = vsub.f32 %v585_v54, %v598_v56 }
 0xb3b   : > { %607 = vrot.lane.b32.xlu0 %v606_v58, %s1091_s26  ;;  %v600_v8 = vmul.f32 1.442695, %v599_v7 }
 0xbad   : > { %v608_v60 = vpop.permute.xlu0 %607 }
 0xbae   : > { %v610_v61 = vsub.f32 %v1221_v39, %v608_v60 }
 0xbb0   : > { %v611_v62 = vmul.f32 1.442695, %v610_v61 }
 0xbb2   : > { %961 = vpow2.f32 %v611_v62 }
 0xbb3   : > { %963 = vpow2.f32 %v600_v8 }
 0xbbc   : > { %v962_v63 = vpop.eup %961 }
 0xbbd   : > { %v614_v0 = vcombine.high %v962_v63, %v962_v63  ;;  %v964_v9 = vpop.eup %963 }
 0xbbf   : > { %v621_v1 = vrot.slane %v614_v0, %v1218_v37 }
 0xbc1   : > { %v628_v3 = vrot.slane %v621_v1, %v1218_v37  ;;  %v707_v1 = vld [vmem:[#allocation3] sm:$0x1] }
 0xbc3   : > { %v629_v4 = vcombine.high %v628_v3, %v628_v3  ;;  %v722_v3 = vld [vmem:[#allocation4] sm:$0x1] }
 0xbc5   : > { %630 = vrot.lane.b32.xlu1 %v629_v4, %s1083_s9 }
 0xbc9   : > { %646 = vrot.lane.b32.xlu1 %v645_v5, %s1083_s9 }
 0xc37   : > { %v631_v10 = vpop.permute.xlu1 %630 }
 0xc38   : > { %v633_v11 = vadd.f32 %v964_v9, %v631_v10 }
 0xc3a   : > { %965 = vlog2.f32 %v633_v11 }
 0xc3b   : > { %v647_v18 = vpop.permute.xlu1 %646 }
 0xc44   : > { %v966_v14 = vpop.eup %965 }
 0xc45   : > { %v635_v16 = vmul.f32 0.6931472, %v966_v14 }
 0xc47   : > { %v636_v17 = vadd.f32 %v635_v16, %v598_v56 }
 0xc49   : > { %v1305_v19 = vmax.f32 %v636_v17, %v647_v18  ;;  %v642_v15 = vrot.slane %v636_v17, %v1228_v42 }
 0xc4b   : > { %v644_v20 = vsel %vm637_vm15, %v642_v15, %v593_v59  ;;  %v657_v21 = vrot.slane %v1305_v19, %v1228_v42 }
 0xc4c   : > { %693 = vperm.xlu0 %882, %v644_v20  }
 0xc4d   : > { %658 = vrot.lane.b32.xlu1 %v657_v21, %s1091_s26 }
 0xc71   : > { %723 = vadd.xlane.f32.xlu1 %v811_v22 }
 0xcbf   : > { %v659_v42 = vpop.permute.xlu1 %658 }
 0xcc0   : > { %v661_v31 = vsub.f32 %v1221_v39, %v659_v42 }
 0xcc2   : > { %v662_v32 = vmul.f32 1.442695, %v661_v31 }
 0xccb   : > { %v694_v23 = vpop.permute.xlu0 %693 }
 0xccc   : > { %v696_v24 = vmax.f32 %v1221_v39, %v694_v23 }
 0xcce   : > { %v697_v25 = vsub.f32 %v1221_v39, %v696_v24  ;;  %v700_v33 = vsub.f32 %v694_v23, %v696_v24  ;;  %v650_v39 = vsub.f32 %v636_v17, %v1305_v19 }
 0xcd0   : > { %v698_v26 = vmul.f32 1.442695, %v697_v25  ;;  %v701_v27 = vmul.f32 1.442695, %v700_v33  ;;  %v651_v47 = vmul.f32 1.442695, %v650_v39 }
 0xcd2   : > { %967 = vpow2.f32 %v698_v26 }
 0xcd3   : > { %969 = vpow2.f32 %v701_v27 }
 0xcdc   : > { %v968_v28 = vpop.eup %967 }
 0xcdd   : > { %v970_v29 = vpop.eup %969 }
 0xcde   : > { %v703_v30 = vadd.f32 %v970_v29, %v968_v28 }
 0xce0   : > { %971 = vlog2.f32 %v703_v30 }
 0xce1   : > { %973 = vpow2.f32 %v662_v32 }
 0xce2   : > { %975 = vpow2.f32 %v651_v47 }
 0xcea   : > { %v972_v34 = vpop.eup %971 }
 0xceb   : > { %v705_v35 = vmul.f32 0.6931472, %v972_v34  ;;  %v974_v41 = vpop.eup %973 }
 0xcec   : > { %v665_v12 = vcombine.high %v974_v41, %v974_v41  ;;  %v976_v53 = vpop.eup %975 }
 0xced   : > { %v706_v36 = vadd.f32 %v705_v35, %v696_v24 }
 0xcee   : > { %v672_v43 = vrot.slane %v665_v12, %v1218_v37 }
 0xcef   : > { %v708_v38 = vsub.f32 %v1198_v2, %v706_v36 }
 0xcf0   : > { %v673_v44 = vcombine.high %v672_v43, %v672_v43 }
 0xcf1   : > { %v709_v40 = vmul.f32 %v811_v22, %v708_v38 }
 0xcf2   : > { %v680_v45 = vrot.slane %v673_v44, %v1218_v37 }
 0xcf3   : > { %710 = vadd.xlane.f32.xlu0 %v709_v40 }
 0xcf4   : > { %v681_v46 = vcombine.high %v680_v45, %v680_v45 }
 0xcfe   : > { %v724_v13 = vpop.xlane.xlu1 %723 }
 0xcff   : > { %v725_v48 = vrot.slane %v724_v13, 4 }
 0xd01   : > { %v726_v49 = vadd.f32 %v725_v48, %v724_v13 }
 0xd03   : > { %v727_v2 = vrot.slane %v726_v49, 2 }
 0xd05   : > { %v728_v54 = vadd.f32 %v727_v2, %v726_v49 }
 0xd07   : > { %v729_v58 = vrot.slane %v728_v54, 1 }
 0xd09   : > { %682 = vrot.lane.b32.xlu0 %v681_v46, %s1083_s9  ;;  %v730_v61 = vadd.f32 %v729_v58, %v728_v54 }
 0xd80   : > { %v711_v50 = vpop.xlane.xlu0 %710 }
 0xd81   : > { %v712_v51 = vrot.slane %v711_v50, 4 }
 0xd83   : > { %v713_v52 = vadd.f32 %v712_v51, %v711_v50 }
 0xd84   : > { %v683_v55 = vpop.permute.xlu0 %682 }
 0xd85   : > { %v714_v56 = vrot.slane %v713_v52, 2  ;;  %v685_v57 = vadd.f32 %v976_v53, %v683_v55 }
 0xd87   : > { %977 = vlog2.f32 %v685_v57  ;;  %v715_v37 = vadd.f32 %v714_v56, %v713_v52 }
 0xd89   : > { %v716_v59 = vrot.slane %v715_v37, 1 }
 0xd8b   : > { %v717_v60 = vadd.f32 %v716_v59, %v715_v37 }
 0xd8d   : > { %817 = vpush %v717_v60 }
 0xd8e   : > { %819 = vpush %v730_v61 }
 0xd91   : > { %v978_v62 = vpop.eup %977 }
 0xd92   : > { %v687_v63 = vmul.f32 0.6931472, %v978_v62 }
 0xd94   : > { %v688_v0 = vadd.f32 %v687_v63, %v1305_v19 }
 0xd96   : > { %690 = vst.msk [vmem:[#allocation2] sm:$0x1] %vm689_vm0, %v688_v0 }
 0xdbd   : > { %738 = sbr.rel (%p812_p7) target bundleno = 3547 (0xddb), region = 36 }
 0xdbe   : > { %s818_s27 = spop %817 }
 0xdbf   : > { %v719_v4 = vstv %s818_s27  ;;  %s820_s28 = spop %819 }
 0xdc0   : > { %v720_v5 = vadd.f32 %v719_v4, %v707_v1  ;;  %v732_v6 = vstv %s820_s28 }
 0xdc1   : > { %v733_v7 = vadd.f32 %v732_v6, %v722_v3 }
 0xdc2   : > { %721 = vst.msk [vmem:[#allocation3] sm:$0x1] %vm689_vm0, %v720_v5 }
 0xdc3   : > { %734 = vst.msk [vmem:[#allocation4] sm:$0x1] %vm689_vm0, %v733_v7 }
 0xdc9   : > { %v741_v10 = vld [vmem:[#allocation3] sm:$0x1] }
 0xdca   : > { %v739_v8 = vld [vmem:[#allocation4] sm:$0x1]  ;;  %v742_v11 = vsub.f32 0.0, %v741_v10 }
 0xdcb   : > { %v740_v9 = vmax.f32 %v739_v8, 1.0 }
 0xdcd   : > { %979 = vrcp.f32 %v740_v9 }
 0xdd7   : > { %v980_v14 = vpop.eup %979 }
 0xdd8   : > { %v744_v16 = vmul.f32 %v980_v14, %v742_v11 }
 0xdda   : > { %745 = vst.msk [vmem:[#allocation8] sm:$0x1] %vm689_vm0, %v744_v16 }
 0xddb PF: > { %p832_p8 = scmp.eq.s32.totalorder %s1123_s10, 2  ;;  %s1093_s29 = smov [#allocation8]  }
 0xddc   : > { %s753_s30 = sshll.u32 %s1093_s29, 4  ;;  %s754_s30 = int_to_ptr.vmem [resolvable:$true] %s753_s30 }
 0xddd   : > { %s1011_s2 = scalar_lea.vmem %s754_s30, 16  ;;  %s1017_s3 = scalar_lea.vmem %s754_s30, 32 }
 0xdde   : > { %p1012_p4 = scmp.ne.s32.totalorder %s754_s30, %s1011_s2  ;;  %p1018_p9 = scmp.lt.s32.totalorder %s754_s30, %s754_s30 }
 0xddf   : > { %p1019_p11 = scmp.lt.s32.totalorder %s1017_s3, %s1011_s2 }
 0xde0   : > { %p1013_p5 = pnand %p1012_p4, %p832_p8 }
 0xde1   : > { %p1020_p13 = por %p1019_p11, %p1018_p9 }
 0xde2   : > { %p1014_p6 = pneg %p1013_p5 }
 0xde4   : > { %p1021_p0 = pnand %p1020_p13, %p1014_p6 }
 0xde6   : > { %1024 = shalt.err (!%p1021_p0)
}
 0xde7   : > { %s1025_s6 = scalar_lea.hbm %s1364_s1, 16 }
 0xde8   : > { %p1026_p1 = scmp.ne.s32.totalorder %s1364_s1, %s1025_s6  ;;  %p1031_p2 = scmp.lt.u32.totalorder %s1025_s6, %s1364_s1 }
 0xdea   : > { %p1027_p10 = pnand %p1026_p1, %p832_p8 }
 0xdec   : > { %p1028_p12 = pneg %p1027_p10 }
 0xdee   : > { %p1033_p3 = pnand %p1031_p2, %p1028_p12 }
 0xdf0   : > { %1036 = shalt.err (!%p1033_p3)
}
 0xdf1   : > { %824 = dma.vmem_to_hbm [thread:$0]  (%p832_p8), %s754_s30, 16, %s1364_s1, [#allocation7]  }
 0xdf2   : > { %1058 = dma.done.wait (%p832_p8), [#allocation7], 16  }
 0xdf3   : > { %1060 = vsyncadd (%p832_p8), [#allocation7], 4294967280 }
 0xdf4 PF: > { %p12_p7 = scmp.ge.s32.totalorder %s1126_s11, 5   ;;  %s1367_s6 = smov %s1067_s7 }
 0xdf5   : > { %s1368_s7 = smov %s1071_s8  ;;  %s1369_s8 = smov %s1136_s14 }
 0xdf6   : > { %s1370_s9 = smov %s1126_s11  ;;  %14 = sbr.rel (!%p12_p7) target bundleno = 4 (0x4), region = 70 }
 0xdfd   :  { %766 = vsyncpa [#allocation6], 1 }
 0xdfe   :  { %768 = vsyncpa [#allocation6 + $0x1], 1 }
 0xdff   :  { %769 = vsyncpa [#allocation7], 1 }
 0xe00   :  { %771 = vsyncpa [#allocation7 + $0x1], 1 }

</bundles_post_ra>
